<compile_context>
chip_gen: v6e
topology: v6e:2x2x1
jax: 0.10.0
libtpu: 0.0.40
codegen_flags: <defaults>
</compile_context>

<pallas_src>
import functools

import jax
import jax.numpy as jnp
import numpy as np
from jax.experimental import pallas as pl
from jax.experimental.pallas import tpu as pltpu


# ----------------------------------------------------------------------------
# Shared per-batch-tile compute: GraphConvolution + fused K-tap temporal conv.
# All arrays are channel-major / lane-dense, lane index p = t*N + n.
# ----------------------------------------------------------------------------
def _gcn_tconv_tile(x_ref, adjbig_ref, wfoldT_ref, bfold_ref, bconv_ref, T, N):
    f32 = jnp.float32
    TN = T * N
    KC = wfoldT_ref.shape[0]
    Cout = bconv_ref.shape[0]
    K = KC // Cout
    pad = K // 2

    xb = x_ref[0]                                                    # (Cin, TN) bf16

    # GraphConvolution adjacency: one lane-dense MXU dot against the block-diagonal
    # kron(I_T, adj^T) -- no in-kernel reshapes / relayouts.
    gx = jnp.dot(xb, adjbig_ref[...], preferred_element_type=f32)    # (Cin, TN) f32

    # GCN weight + all K temporal-conv taps folded into a single MXU matmul.
    # TODO(synk): for non-toy Cout / long TN, loop K dots of (Cout,Cin)@(Cin,TN)
    #             that shift-accumulate immediately (K-fold smaller live tensor).
    m = jnp.dot(wfoldT_ref[...], gx.astype(jnp.bfloat16),
                preferred_element_type=f32)                          # (KC, TN) f32
    m = m + bfold_ref[...]        # per-tap GCN bias (masked jointly with data below)

    # Temporal conv: shifted + masked register accumulation of the K taps.
    lane = jax.lax.broadcasted_iota(jnp.int32, (Cout, TN), 1)        # hoisted out of k-loop
    acc = jnp.zeros((Cout, TN), f32)
    for k in range(K):
        s = k - pad                           # temporal shift of this tap
        lo = max(0, -s)                       # valid output t range [lo, hi)
        hi = min(T, T - s)
        if hi <= lo:
            continue                          # degenerate (T < K//2)
        tap = m[k * Cout:(k + 1) * Cout, :]   # (Cout, TN)
        if s == 0:
            acc = acc + tap
        else:
            # out[:, p] += tap[:, p + s*N]  (shift whole t-blocks of N lanes, XLU roll)
            rolled = pltpu.roll(tap, shift=((-s) * N) % TN, axis=1)
            valid = (lane >= lo * N) & (lane < hi * N)
            acc = acc + jnp.where(valid, rolled, 0.0)

    return acc + bconv_ref[...]                                      # (Cout, TN) f32


# ----------------------------------------------------------------------------
# Fused single-pass kernel: conv + resident pre-BN output + BN/ReLU epilogue.
# ----------------------------------------------------------------------------
def _fused_kernel(x_ref, adjbig_ref, wfoldT_ref, bfold_ref, bconv_ref,
                  gamma_ref, beta_ref, o_ref, sum_sc, ssq_sc, *, T, N, count):
    b = pl.program_id(0)

    @pl.when(b == 0)
    def _():
        sum_sc[...] = jnp.zeros_like(sum_sc)
        ssq_sc[...] = jnp.zeros_like(ssq_sc)

    y = _gcn_tconv_tile(x_ref, adjbig_ref, wfoldT_ref, bfold_ref, bconv_ref, T, N)

    # BN partials accumulated in f32 from the f32 pre-store values.
    sum_sc[...] += jnp.sum(y, axis=1, keepdims=True)                 # (Cout, 1)
    ssq_sc[...] += jnp.sum(y * y, axis=1, keepdims=True)

    # Output block index is constant over the grid -> stays resident in VMEM;
    # the pre-BN value never round-trips through HBM.
    o_ref[b] = y

    @pl.when(b == pl.num_programs(0) - 1)
    def _():
        inv_n = 1.0 / count
        mean = sum_sc[...] * inv_n
        var = ssq_sc[...] * inv_n - mean * mean        # biased (training-mode) variance
        rstd = jax.lax.rsqrt(var + 1e-5)
        scale = gamma_ref[...] * rstd                  # (Cout, 1)
        shift = beta_ref[...] - mean * scale
        o_ref[...] = jnp.maximum(o_ref[...] * scale[None] + shift[None], 0.0)


# ----------------------------------------------------------------------------
# Two-pass fallback (large problems): pass 1 conv + partial stats (bf16 store),
# pass 2 pure FMA + ReLU with wrapper-finalized scale/shift.
# ----------------------------------------------------------------------------
def _conv_stats_kernel(x_ref, adjbig_ref, wfoldT_ref, bfold_ref, bconv_ref,
                       y_ref, s_ref, ss_ref, *, T, N):
    y = _gcn_tconv_tile(x_ref, adjbig_ref, wfoldT_ref, bfold_ref, bconv_ref, T, N)
    # Stats from the f32 values (intermediate HBM store is bf16).
    s_ref[0] = jnp.sum(y, axis=1, keepdims=True)                     # (Cout, 1)
    ss_ref[0] = jnp.sum(y * y, axis=1, keepdims=True)
    y_ref[0] = y.astype(y_ref.dtype)                                 # lane-dense bf16 store


def _bn_relu_kernel(y_ref, scale_ref, shift_ref, o_ref):
    y = y_ref[0].astype(jnp.float32)
    o_ref[0] = jnp.maximum(y * scale_ref[...] + shift_ref[...], 0.0)


# ----------------------------------------------------------------------------
# VMEM budgeting helpers
# ----------------------------------------------------------------------------
def _padded_bytes(shape, itemsize):
    shape = tuple(int(s) for s in shape)
    lead = int(np.prod(shape[:-2])) if len(shape) > 2 else 1
    sub_mult = 8 * max(1, 4 // itemsize)                 # sub-32-bit packs along sublanes
    sub = -(-shape[-2] // sub_mult) * sub_mult
    lane = -(-shape[-1] // 128) * 128
    return itemsize * lead * sub * lane


def _vmem_limit_bytes(tile_bytes):
    try:
        cap_total = int(pltpu.get_tpu_info().vmem_capacity_bytes)
    except Exception:                                    # pragma: no cover - non-TPU fallback
        cap_total = 64 << 20                             # conservative (v7x physical VMEM)
    cap = cap_total - max(8 << 20, cap_total // 8)       # headroom for Mosaic internal scratch
    need = 2 * tile_bytes + (8 << 20)                    # double-buffering + slack
    return int(min(max(need, 32 << 20), cap))


# ----------------------------------------------------------------------------
# Wrapper
# ----------------------------------------------------------------------------
@functools.partial(jax.jit, static_argnames=("fuse",))
def stgnn_block_forward(x_nchw, adj, wg, bg, wconv, bconv, gamma, beta, fuse=None):
    """x_nchw: (B, Cin, T, N) float32 (PyTorch layout). Returns (B, Cout, T, N) f32."""
    B, Cin, T, N = x_nchw.shape
    Cout = wg.shape[1]
    K = wconv.shape[2]
    TN = T * N
    KC = K * Cout
    F32 = jnp.float32
    BF16 = jnp.bfloat16

    # Trace-time contracts (PyTorch module uses padding = K//2, i.e. same-length only
    # for odd K; Conv2d kernel is (K, 1)).
    assert K % 2 == 1, "only odd temporal kernel sizes (padding=K//2) are supported"
    assert wconv.shape == (Cout, Cout, K, 1)
    assert adj.shape == (N, N)
    # TODO(synk): BatchNorm running-stat buffer updates (module side effect) are not produced.
    # TODO(synk): for very long T (TN >> ~2K), add a T-tile grid axis with a K//2 halo
    #             index_map and switch the adjacency back to the (Cin*T, N) form.

    if fuse is None:
        fuse = (B * Cout * TN * 4) <= (8 << 20)          # keep whole pre-BN output in VMEM?

    # ---- parameter folding (tiny, parameter-only preprocessing) ----
    wt = wconv[:, :, :, 0].astype(F32)                                    # (Cout, Cout, K)
    wfoldT = jnp.einsum('ic,ock->koi', wg.astype(F32), wt).reshape(KC, Cin).astype(BF16)
    bfold = jnp.einsum('c,ock->ko', bg.astype(F32), wt).reshape(KC, 1)
    # Block-diagonal adjacency: gx = x @ kron(I_T, adj^T), fully lane-dense.
    adj_big = jnp.kron(jnp.eye(T, dtype=F32), adj.astype(F32).T).astype(BF16)   # (TN, TN)
    bconv2 = bconv.reshape(Cout, 1).astype(F32)
    gamma2 = gamma.reshape(Cout, 1).astype(F32)
    beta2 = beta.reshape(Cout, 1).astype(F32)

    # x enters the kernels as a pure reshape of NCHW (lane p = t*N + n), cast to bf16
    # to halve the DMA / VMEM footprint of the MXU operand.
    x_in = x_nchw.astype(BF16).reshape(B, Cin, TN)

    # ---- VMEM budget sized from the tile working set, capped per generation ----
    tiles = (_padded_bytes((1, Cin, TN), 2) + _padded_bytes((TN, TN), 2)
             + _padded_bytes((KC, Cin), 2) + _padded_bytes((KC, 1), 4)
             + 3 * _padded_bytes((Cout, 1), 4) + _padded_bytes((KC, TN), 4))
    if fuse:
        tiles += _padded_bytes((B, Cout, TN), 4)
    else:
        tiles += (_padded_bytes((1, Cout, TN), 2) + _padded_bytes((1, Cout, TN), 4)
                  + 2 * _padded_bytes((1, Cout, 1), 4))
    vmem_budget = _vmem_limit_bytes(tiles)

    matmul_flops = 2 * B * (Cin * TN * TN + KC * Cin * TN)
    param_bytes = TN * TN * 2 + KC * Cin * 2 + (KC + 3 * Cout) * 4
    count = float(B * T * N)

    if fuse:
        # -------- single fused pass: conv -> resident pre-BN output -> BN+ReLU --------
        cparams = pltpu.CompilerParams(dimension_semantics=("arbitrary",),
                                       vmem_limit_bytes=vmem_budget)
        out_flat = pl.pallas_call(
            functools.partial(_fused_kernel, T=T, N=N, count=count),
            grid=(B,),
            in_specs=[
                pl.BlockSpec((1, Cin, TN), lambda b: (b, 0, 0)),
                pl.BlockSpec((TN, TN), lambda b: (0, 0)),
                pl.BlockSpec((KC, Cin), lambda b: (0, 0)),
                pl.BlockSpec((KC, 1), lambda b: (0, 0)),
                pl.BlockSpec((Cout, 1), lambda b: (0, 0)),
                pl.BlockSpec((Cout, 1), lambda b: (0, 0)),
                pl.BlockSpec((Cout, 1), lambda b: (0, 0)),
            ],
            out_specs=pl.BlockSpec((B, Cout, TN), lambda b: (0, 0, 0)),
            out_shape=jax.ShapeDtypeStruct((B, Cout, TN), F32),
            scratch_shapes=[pltpu.VMEM((Cout, 1), F32), pltpu.VMEM((Cout, 1), F32)],
            compiler_params=cparams,
            cost_estimate=pl.CostEstimate(
                flops=matmul_flops + 10 * B * Cout * TN,
                transcendentals=Cout,
                bytes_accessed=B * Cin * TN * 2 + B * Cout * TN * 4 + param_bytes),
        )(x_in, adj_big, wfoldT, bfold, bconv2, gamma2, beta2)
        return out_flat.reshape(B, Cout, T, N)

    # -------- two-pass fallback (large problems): bf16 intermediate round trip --------
    cparams = pltpu.CompilerParams(dimension_semantics=("parallel",),
                                   vmem_limit_bytes=vmem_budget)
    y, psum, psq = pl.pallas_call(
        functools.partial(_conv_stats_kernel, T=T, N=N),
        grid=(B,),
        in_specs=[
            pl.BlockSpec((1, Cin, TN), lambda b: (b, 0, 0)),
            pl.BlockSpec((TN, TN), lambda b: (0, 0)),
            pl.BlockSpec((KC, Cin), lambda b: (0, 0)),
            pl.BlockSpec((KC, 1), lambda b: (0, 0)),
            pl.BlockSpec((Cout, 1), lambda b: (0, 0)),
        ],
        out_specs=(
            pl.BlockSpec((1, Cout, TN), lambda b: (b, 0, 0)),
            pl.BlockSpec((1, Cout, 1), lambda b: (b, 0, 0)),
            pl.BlockSpec((1, Cout, 1), lambda b: (b, 0, 0)),
        ),
        out_shape=(
            jax.ShapeDtypeStruct((B, Cout, TN), BF16),
            jax.ShapeDtypeStruct((B, Cout, 1), F32),
            jax.ShapeDtypeStruct((B, Cout, 1), F32),
        ),
        compiler_params=cparams,
        cost_estimate=pl.CostEstimate(
            flops=matmul_flops + 4 * B * Cout * TN,
            transcendentals=0,
            bytes_accessed=B * Cin * TN * 2 + B * Cout * TN * 2
                           + 2 * B * Cout * 4 + param_bytes),
    )(x_in, adj_big, wfoldT, bfold, bconv2)

    # BN finalization as tiny XLA ops: pass 2 becomes a pure FMA+ReLU streaming kernel.
    mean = jnp.sum(psum, axis=0) / count                               # (Cout, 1)
    var = jnp.sum(psq, axis=0) / count - mean * mean                   # biased variance
    rstd = jax.lax.rsqrt(var + 1e-5)
    scale = gamma2 * rstd
    shift = beta2 - mean * scale

    # TODO(synk): input_output_aliases in-place BN+ReLU needs a bf16 output (dtype must
    #             match the aliased input); kept f32 output here to match the module.
    out_flat = pl.pallas_call(
        _bn_relu_kernel,
        grid=(B,),
        in_specs=[
            pl.BlockSpec((1, Cout, TN), lambda b: (b, 0, 0)),
            pl.BlockSpec((Cout, 1), lambda b: (0, 0)),
            pl.BlockSpec((Cout, 1), lambda b: (0, 0)),
        ],
        out_specs=pl.BlockSpec((1, Cout, TN), lambda b: (b, 0, 0)),
        out_shape=jax.ShapeDtypeStruct((B, Cout, TN), F32),
        compiler_params=cparams,
        cost_estimate=pl.CostEstimate(
            flops=3 * B * Cout * TN,
            transcendentals=0,
            bytes_accessed=B * Cout * TN * (2 + 4) + 2 * Cout * 4),
    )(y, scale, shift)

    return out_flat.reshape(B, Cout, T, N)


# ----------------------------------------------------------------------------
# Pure-JAX reference (mirror of the PyTorch forward, training-mode BN, f32)
# ----------------------------------------------------------------------------
def reference_forward(x_nchw, adj, wg, bg, wconv, bconv, gamma, beta):
    B, Cin, T, N = x_nchw.shape
    Cout = wg.shape[1]
    K = wconv.shape[2]
    xp = jnp.transpose(x_nchw, (0, 2, 3, 1))                             # (B, T, N, Cin)
    s = jnp.einsum('btni,io->btno', xp, wg)
    g = jnp.einsum('mn,btno->btmo', adj, s) + bg
    gn = jnp.transpose(g, (0, 3, 1, 2))                                  # (B, Cout, T, N)
    pad = K // 2
    gp = jnp.pad(gn, ((0, 0), (0, 0), (pad, pad), (0, 0)))
    y = jnp.zeros((B, Cout, T, N), jnp.float32)
    for k in range(K):
        y = y + jnp.einsum('oc,bctn->botn', wconv[:, :, k, 0], gp[:, :, k:k + T, :])
    y = y + bconv[None, :, None, None]
    mean = jnp.mean(y, axis=(0, 2, 3), keepdims=True)
    var = jnp.mean((y - mean) ** 2, axis=(0, 2, 3), keepdims=True)
    ybn = ((y - mean) * jax.lax.rsqrt(var + 1e-5)
           * gamma[None, :, None, None] + beta[None, :, None, None])
    return jnp.maximum(ybn, 0.0)


if __name__ == "__main__":
    # Small deterministic config: B=2, Cin=4, Cout=8, T=16, num_nodes N=8, K=3.
    B, Cin, Cout, T, N, K = 2, 4, 8, 16, 8, 3

    key = jax.random.PRNGKey(0)
    ks = jax.random.split(key, 8)

    x = jax.random.normal(ks[0], (B, Cin, T, N), jnp.float32)
    adj_raw = jax.random.uniform(ks[1], (N, N), jnp.float32, 0.0, 1.0)
    adj = adj_raw / jnp.sum(adj_raw, axis=1, keepdims=True)              # row-normalized adjacency

    # Deterministic parameter init (shapes from the module's __init__).
    wg = jax.random.uniform(ks[2], (Cin, Cout), jnp.float32, -0.5, 0.5)   # GCN weight
    bg = jax.random.uniform(ks[3], (Cout,), jnp.float32, -0.1, 0.1)       # GCN bias
    wconv = jax.random.uniform(ks[4], (Cout, Cout, K, 1), jnp.float32, -0.3, 0.3)  # Conv2d weight
    bconv = jax.random.uniform(ks[5], (Cout,), jnp.float32, -0.1, 0.1)    # Conv2d bias
    gamma = 1.0 + 0.1 * jax.random.uniform(ks[6], (Cout,), jnp.float32, -1.0, 1.0)  # BN weight
    beta = 0.1 * jax.random.uniform(ks[7], (Cout,), jnp.float32, -1.0, 1.0)         # BN bias

    ref = reference_forward(x, adj, wg, bg, wconv, bconv, gamma, beta)

    # Fused single-pass kernel (default path for this size).
    out_fused = stgnn_block_forward(x, adj, wg, bg, wconv, bconv, gamma, beta, fuse=True)
    out_fused = jax.block_until_ready(out_fused)
    # Two-pass fallback path (bf16 intermediate), exercised to keep it compiling.
    out_2pass = stgnn_block_forward(x, adj, wg, bg, wconv, bconv, gamma, beta, fuse=False)
    out_2pass = jax.block_until_ready(out_2pass)

    # Tolerance covers bf16 MXU operands / bf16 intermediate vs. the f32 reference.
    np.testing.assert_allclose(np.asarray(out_fused), np.asarray(ref), rtol=3e-2, atol=3e-2)
    np.testing.assert_allclose(np.asarray(out_2pass), np.asarray(ref), rtol=3e-2, atol=3e-2)

    print("KERNEL_OK")
</pallas_src>

<mosaic_0001>
module attributes {stable_mosaic.version = 11 : i64} {
  func.func @_fused_kernel(%arg0: i32, %arg1: memref<1x4x128xbf16, #tpu.memory_space<vmem>>, %arg2: memref<128x128xbf16, #tpu.memory_space<vmem>>, %arg3: memref<24x4xbf16, #tpu.memory_space<vmem>>, %arg4: memref<24x1xf32, #tpu.memory_space<vmem>>, %arg5: memref<8x1xf32, #tpu.memory_space<vmem>>, %arg6: memref<8x1xf32, #tpu.memory_space<vmem>>, %arg7: memref<8x1xf32, #tpu.memory_space<vmem>>, %arg8: memref<2x8x128xf32, #tpu.memory_space<vmem>>, %arg9: memref<8x1xf32, #tpu.memory_space<vmem>>, %arg10: memref<8x1xf32, #tpu.memory_space<vmem>>) attributes {dimension_semantics = [#tpu.dimension_semantics<arbitrary>], iteration_bounds = array<i64: 2>, scalar_prefetch = 0 : i64, scratch_operands = 2 : i64, tpu.core_type = #tpu.core_type<tc>, window_params = [{transform_indices = @transform_0, window_bounds = array<i64: 1, 4, 128>}, {pipeline_mode = #tpu.pipeline_mode<synchronous>, transform_indices = @transform_1, window_bounds = array<i64: 128, 128>}, {pipeline_mode = #tpu.pipeline_mode<synchronous>, transform_indices = @transform_2, window_bounds = array<i64: 24, 4>}, {pipeline_mode = #tpu.pipeline_mode<synchronous>, transform_indices = @transform_3, window_bounds = array<i64: 24, 1>}, {pipeline_mode = #tpu.pipeline_mode<synchronous>, transform_indices = @transform_4, window_bounds = array<i64: 8, 1>}, {pipeline_mode = #tpu.pipeline_mode<synchronous>, transform_indices = @transform_5, window_bounds = array<i64: 8, 1>}, {pipeline_mode = #tpu.pipeline_mode<synchronous>, transform_indices = @transform_6, window_bounds = array<i64: 8, 1>}, {pipeline_mode = #tpu.pipeline_mode<synchronous>, transform_indices = @transform_7, window_bounds = array<i64: 2, 8, 128>}]} {
    %c0_i32 = arith.constant 0 : i32
    %0 = arith.cmpi eq, %arg0, %c0_i32 : i32
    %1 = arith.extui %0 : i1 to i32
    %c0_i32_0 = arith.constant 0 : i32
    %2 = arith.cmpi ne, %1, %c0_i32_0 : i32
    scf.if %2 {
      %cst_31 = arith.constant 0.000000e+00 : f32
      %58 = vector.broadcast %cst_31 : f32 to vector<8x1xf32>
      %c0_32 = arith.constant 0 : index
      %c0_33 = arith.constant 0 : index
      %59 = vector.load %arg9[%c0_32, %c0_33] : memref<8x1xf32, #tpu.memory_space<vmem>>, vector<8x1xf32>
      tpu.vector_store %arg9[%c0_32, %c0_33], %58 {strides = array<i32>} : memref<8x1xf32, #tpu.memory_space<vmem>>, vector<8x1xf32>,
      %cst_34 = arith.constant 0.000000e+00 : f32
      %60 = vector.broadcast %cst_34 : f32 to vector<8x1xf32>
      %c0_35 = arith.constant 0 : index
      %c0_36 = arith.constant 0 : index
      %61 = vector.load %arg10[%c0_35, %c0_36] : memref<8x1xf32, #tpu.memory_space<vmem>>, vector<8x1xf32>
      tpu.vector_store %arg10[%c0_35, %c0_36], %60 {strides = array<i32>} : memref<8x1xf32, #tpu.memory_space<vmem>>, vector<8x1xf32>,
    } else {
    }
    %c0 = arith.constant 0 : index
    %c0_1 = arith.constant 0 : index
    %c0_2 = arith.constant 0 : index
    %3 = vector.load %arg1[%c0, %c0_1, %c0_2] : memref<1x4x128xbf16, #tpu.memory_space<vmem>>, vector<1x4x128xbf16>
    %4 = vector.shape_cast %3 : vector<1x4x128xbf16> to vector<4x128xbf16>
    %c0_3 = arith.constant 0 : index
    %c0_4 = arith.constant 0 : index
    %5 = vector.load %arg2[%c0_3, %c0_4] : memref<128x128xbf16, #tpu.memory_space<vmem>>, vector<128x128xbf16>
    %cst = arith.constant dense<0.000000e+00> : vector<4x128xf32>
    %6 = tpu.matmul %4, %5, %cst {dimension_numbers = #tpu.dot_dimension_numbers<[1], [0], [0], [1], [0, 0, 1, 1], [], []>} : vector<4x128xbf16>, vector<128x128xbf16>, vector<4x128xf32> -> vector<4x128xf32>
    %c0_5 = arith.constant 0 : index
    %c0_6 = arith.constant 0 : index
    %7 = vector.load %arg3[%c0_5, %c0_6] : memref<24x4xbf16, #tpu.memory_space<vmem>>, vector<24x4xbf16>
    %8 = arith.truncf %6 : vector<4x128xf32> to vector<4x128xbf16>
    %cst_7 = arith.constant dense<0.000000e+00> : vector<24x128xf32>
    %9 = tpu.matmul %7, %8, %cst_7 {dimension_numbers = #tpu.dot_dimension_numbers<[1], [0], [0], [1], [0, 0, 1, 1], [], []>} : vector<24x4xbf16>, vector<4x128xbf16>, vector<24x128xf32> -> vector<24x128xf32>
    %c0_8 = arith.constant 0 : index
    %c0_9 = arith.constant 0 : index
    %10 = vector.load %arg4[%c0_8, %c0_9] : memref<24x1xf32, #tpu.memory_space<vmem>>, vector<24x1xf32>
    %11 = vector.broadcast %10 : vector<24x1xf32> to vector<24x128xf32>
    %12 = arith.addf %9, %11 : vector<24x128xf32>
    %13 = tpu.iota {dimensions = array<i32: 1>} : vector<8x128xi32>
    %cst_10 = arith.constant 0.000000e+00 : f32
    %14 = vector.broadcast %cst_10 : f32 to vector<8x128xf32>
    %15 = vector.extract_strided_slice %12 {offsets = [0, 0], sizes = [8, 128], strides = [1, 1]} : vector<24x128xf32> to vector<8x128xf32>
    %c8_i32 = arith.constant 8 : i32
    %16 = tpu.dynamic_rotate %15 by %c8_i32 dim 1 : vector<8x128xf32>, i32 -> vector<8x128xf32>
    %c8_i32_11 = arith.constant 8 : i32
    %17 = vector.broadcast %c8_i32_11 : i32 to vector<8x128xi32>
    %18 = arith.cmpi sge, %13, %17 : vector<8x128xi32>
    %c128_i32 = arith.constant 128 : i32
    %19 = vector.broadcast %c128_i32 : i32 to vector<8x128xi32>
    %20 = arith.cmpi slt, %13, %19 : vector<8x128xi32>
    %21 = arith.andi %18, %20 : vector<8x128xi1>
    %cst_12 = arith.constant 0.000000e+00 : f32
    %22 = vector.broadcast %cst_12 : f32 to vector<8x128xf32>
    %23 = arith.select %21, %16, %22 : vector<8x128xi1>, vector<8x128xf32>
    %24 = arith.addf %14, %23 : vector<8x128xf32>
    %25 = vector.extract_strided_slice %12 {offsets = [8, 0], sizes = [8, 128], strides = [1, 1]} : vector<24x128xf32> to vector<8x128xf32>
    %26 = arith.addf %24, %25 : vector<8x128xf32>
    %27 = vector.extract_strided_slice %12 {offsets = [16, 0], sizes = [8, 128], strides = [1, 1]} : vector<24x128xf32> to vector<8x128xf32>
    %c120_i32 = arith.constant 120 : i32
    %28 = tpu.dynamic_rotate %27 by %c120_i32 dim 1 : vector<8x128xf32>, i32 -> vector<8x128xf32>
    %c0_i32_13 = arith.constant 0 : i32
    %29 = vector.broadcast %c0_i32_13 : i32 to vector<8x128xi32>
    %30 = arith.cmpi sge, %13, %29 : vector<8x128xi32>
    %c120_i32_14 = arith.constant 120 : i32
    %31 = vector.broadcast %c120_i32_14 : i32 to vector<8x128xi32>
    %32 = arith.cmpi slt, %13, %31 : vector<8x128xi32>
    %33 = arith.andi %30, %32 : vector<8x128xi1>
    %cst_15 = arith.constant 0.000000e+00 : f32
    %34 = vector.broadcast %cst_15 : f32 to vector<8x128xf32>
    %35 = arith.select %33, %28, %34 : vector<8x128xi1>, vector<8x128xf32>
    %36 = arith.addf %26, %35 : vector<8x128xf32>
    %c0_16 = arith.constant 0 : index
    %c0_17 = arith.constant 0 : index
    %37 = vector.load %arg5[%c0_16, %c0_17] : memref<8x1xf32, #tpu.memory_space<vmem>>, vector<8x1xf32>
    %38 = vector.broadcast %37 : vector<8x1xf32> to vector<8x128xf32>
    %39 = arith.addf %36, %38 : vector<8x128xf32>
    %c0_18 = arith.constant 0 : index
    %c0_19 = arith.constant 0 : index
    %40 = vector.load %arg9[%c0_18, %c0_19] : memref<8x1xf32, #tpu.memory_space<vmem>>, vector<8x1xf32>
    %cst_20 = arith.constant dense<0.000000e+00> : vector<8xf32>
    %41 = vector.multi_reduction <add>, %39, %cst_20 [1] : vector<8x128xf32> to vector<8xf32>
    %42 = vector.shape_cast %41 : vector<8xf32> to vector<8x1xf32>
    %43 = arith.addf %40, %42 : vector<8x1xf32>
    %c0_21 = arith.constant 0 : index
    %c0_22 = arith.constant 0 : index
    %44 = vector.load %arg9[%c0_21, %c0_22] : memref<8x1xf32, #tpu.memory_space<vmem>>, vector<8x1xf32>
    tpu.vector_store %arg9[%c0_21, %c0_22], %43 {strides = array<i32>} : memref<8x1xf32, #tpu.memory_space<vmem>>, vector<8x1xf32>,
    %c0_23 = arith.constant 0 : index
    %c0_24 = arith.constant 0 : index
    %45 = vector.load %arg10[%c0_23, %c0_24] : memref<8x1xf32, #tpu.memory_space<vmem>>, vector<8x1xf32>
    %46 = arith.mulf %39, %39 : vector<8x128xf32>
    %cst_25 = arith.constant dense<0.000000e+00> : vector<8xf32>
    %47 = vector.multi_reduction <add>, %46, %cst_25 [1] : vector<8x128xf32> to vector<8xf32>
    %48 = vector.shape_cast %47 : vector<8xf32> to vector<8x1xf32>
    %49 = arith.addf %45, %48 : vector<8x1xf32>
    %c0_26 = arith.constant 0 : index
    %c0_27 = arith.constant 0 : index
    %50 = vector.load %arg10[%c0_26, %c0_27] : memref<8x1xf32, #tpu.memory_space<vmem>>, vector<8x1xf32>
    tpu.vector_store %arg10[%c0_26, %c0_27], %49 {strides = array<i32>} : memref<8x1xf32, #tpu.memory_space<vmem>>, vector<8x1xf32>,
    %51 = arith.index_cast %arg0 : i32 to index
    %c0_28 = arith.constant 0 : index
    %c0_29 = arith.constant 0 : index
    %52 = vector.load %arg8[%51, %c0_28, %c0_29] : memref<2x8x128xf32, #tpu.memory_space<vmem>>, vector<1x8x128xf32>
    %53 = vector.shape_cast %52 : vector<1x8x128xf32> to vector<8x128xf32>
    %54 = vector.shape_cast %39 : vector<8x128xf32> to vector<1x8x128xf32>
    tpu.vector_store %arg8[%51, %c0_28, %c0_29], %54 {strides = array<i32>} : memref<2x8x128xf32, #tpu.memory_space<vmem>>, vector<1x8x128xf32>,
    %c1_i32 = arith.constant 1 : i32
    %55 = arith.cmpi eq, %arg0, %c1_i32 : i32
    %56 = arith.extui %55 : i1 to i32
    %c0_i32_30 = arith.constant 0 : i32
    %57 = arith.cmpi ne, %56, %c0_i32_30 : i32
    scf.if %57 {
      %c0_31 = arith.constant 0 : index
      %c0_32 = arith.constant 0 : index
      %58 = vector.load %arg9[%c0_31, %c0_32] : memref<8x1xf32, #tpu.memory_space<vmem>>, vector<8x1xf32>
      %cst_33 = arith.constant 3.906250e-03 : f32
      %59 = vector.broadcast %cst_33 : f32 to vector<8x1xf32>
      %60 = arith.mulf %58, %59 : vector<8x1xf32>
      %c0_34 = arith.constant 0 : index
      %c0_35 = arith.constant 0 : index
      %61 = vector.load %arg10[%c0_34, %c0_35] : memref<8x1xf32, #tpu.memory_space<vmem>>, vector<8x1xf32>
      %cst_36 = arith.constant 3.906250e-03 : f32
      %62 = vector.broadcast %cst_36 : f32 to vector<8x1xf32>
      %63 = arith.mulf %61, %62 : vector<8x1xf32>
      %64 = arith.mulf %60, %60 : vector<8x1xf32>
      %65 = arith.subf %63, %64 : vector<8x1xf32>
      %cst_37 = arith.constant 9.99999974E-6 : f32
      %66 = vector.broadcast %cst_37 : f32 to vector<8x1xf32>
      %67 = arith.addf %65, %66 : vector<8x1xf32>
      %68 = math.rsqrt %67 : vector<8x1xf32>
      %c0_38 = arith.constant 0 : index
      %c0_39 = arith.constant 0 : index
      %69 = vector.load %arg6[%c0_38, %c0_39] : memref<8x1xf32, #tpu.memory_space<vmem>>, vector<8x1xf32>
      %70 = arith.mulf %69, %68 : vector<8x1xf32>
      %c0_40 = arith.constant 0 : index
      %c0_41 = arith.constant 0 : index
      %71 = vector.load %arg7[%c0_40, %c0_41] : memref<8x1xf32, #tpu.memory_space<vmem>>, vector<8x1xf32>
      %72 = arith.mulf %60, %70 : vector<8x1xf32>
      %73 = arith.subf %71, %72 : vector<8x1xf32>
      %c0_42 = arith.constant 0 : index
      %c0_43 = arith.constant 0 : index
      %c0_44 = arith.constant 0 : index
      %74 = vector.load %arg8[%c0_42, %c0_43, %c0_44] : memref<2x8x128xf32, #tpu.memory_space<vmem>>, vector<2x8x128xf32>
      %75 = vector.shape_cast %70 : vector<8x1xf32> to vector<1x8x1xf32>
      %76 = vector.broadcast %75 : vector<1x8x1xf32> to vector<2x8x128xf32>
      %77 = arith.mulf %74, %76 : vector<2x8x128xf32>
      %78 = vector.shape_cast %73 : vector<8x1xf32> to vector<1x8x1xf32>
      %79 = vector.broadcast %78 : vector<1x8x1xf32> to vector<2x8x128xf32>
      %80 = arith.addf %77, %79 : vector<2x8x128xf32>
      %cst_45 = arith.constant 0.000000e+00 : f32
      %81 = vector.broadcast %cst_45 : f32 to vector<2x8x128xf32>
      %82 = arith.maximumf %80, %81 : vector<2x8x128xf32>
      %c0_46 = arith.constant 0 : index
      %c0_47 = arith.constant 0 : index
      %c0_48 = arith.constant 0 : index
      %83 = vector.load %arg8[%c0_46, %c0_47, %c0_48] : memref<2x8x128xf32, #tpu.memory_space<vmem>>, vector<2x8x128xf32>
      tpu.vector_store %arg8[%c0_46, %c0_47, %c0_48], %82 {strides = array<i32>} : memref<2x8x128xf32, #tpu.memory_space<vmem>>, vector<2x8x128xf32>,
    } else {
    }
    return
  }
  func.func @transform_0(%arg0: i32) -> (i32, i32, i32) {
    %c0_i32 = arith.constant 0 : i32
    %c0_i32_0 = arith.constant 0 : i32
    %c0_i32_1 = arith.constant 0 : i32
    return %arg0, %c0_i32, %c0_i32_0 : i32, i32, i32
  }
  func.func @transform_1(%arg0: i32) -> (i32, i32) {
    %c0_i32 = arith.constant 0 : i32
    %c0_i32_0 = arith.constant 0 : i32
    %c0_i32_1 = arith.constant 0 : i32
    return %c0_i32, %c0_i32_0 : i32, i32
  }
  func.func @transform_2(%arg0: i32) -> (i32, i32) {
    %c0_i32 = arith.constant 0 : i32
    %c0_i32_0 = arith.constant 0 : i32
    %c0_i32_1 = arith.constant 0 : i32
    return %c0_i32, %c0_i32_0 : i32, i32
  }
  func.func @transform_3(%arg0: i32) -> (i32, i32) {
    %c0_i32 = arith.constant 0 : i32
    %c0_i32_0 = arith.constant 0 : i32
    %c0_i32_1 = arith.constant 0 : i32
    return %c0_i32, %c0_i32_0 : i32, i32
  }
  func.func @transform_4(%arg0: i32) -> (i32, i32) {
    %c0_i32 = arith.constant 0 : i32
    %c0_i32_0 = arith.constant 0 : i32
    %c0_i32_1 = arith.constant 0 : i32
    return %c0_i32, %c0_i32_0 : i32, i32
  }
  func.func @transform_5(%arg0: i32) -> (i32, i32) {
    %c0_i32 = arith.constant 0 : i32
    %c0_i32_0 = arith.constant 0 : i32
    %c0_i32_1 = arith.constant 0 : i32
    return %c0_i32, %c0_i32_0 : i32, i32
  }
  func.func @transform_6(%arg0: i32) -> (i32, i32) {
    %c0_i32 = arith.constant 0 : i32
    %c0_i32_0 = arith.constant 0 : i32
    %c0_i32_1 = arith.constant 0 : i32
    return %c0_i32, %c0_i32_0 : i32, i32
  }
  func.func @transform_7(%arg0: i32) -> (i32, i32, i32) {
    %c0_i32 = arith.constant 0 : i32
    %c0_i32_0 = arith.constant 0 : i32
    %c0_i32_1 = arith.constant 0 : i32
    %c0_i32_2 = arith.constant 0 : i32
    return %c0_i32, %c0_i32_0, %c0_i32_1 : i32, i32, i32
  }
}

</mosaic_0001>

<bundles_post_ra>
// kernel: stgnn_block_forward.1
= control target key start
LH: loop header
LB: loop body
LE: loop exit
PB: predicated region body
PF: predicated region fallthrough
CT: control target
= control target key end

     0   :  { %s715_s24 = smov 0   ;;  %s804_s0 = inlined_call_operand.vmem [shape: bf16[2,4,128], index: 0, kind: input, shape index: {}]   ;;  %s805_s1 = inlined_call_operand.vmem [shape: bf16[128,128], index: 1, kind: input, shape index: {}]   ;;  %s806_s2 = inlined_call_operand.vmem [shape: bf16[24,4], index: 2, kind: input, shape index: {}]   ;;  %s807_s3 = inlined_call_operand.vmem [shape: f32[24,1], index: 3, kind: input, shape index: {}]   ;;  %s808_s4 = inlined_call_operand.vmem [shape: f32[8,1], index: 4, kind: input, shape index: {}]   ;;  %s809_s5 = inlined_call_operand.vmem [shape: f32[8,1], index: 5, kind: input, shape index: {}]   ;;  %s810_s6 = inlined_call_operand.vmem [shape: f32[8,1], index: 6, kind: input, shape index: {}]   ;;  %s811_s7 = inlined_call_operand.vmem [shape: f32[2,8,128], index: 7, kind: output, shape index: {}]  }
   0x1 LB: > { %s721_s25 = sadd.s32 4294967295, %s666_s24   ;;  %p572_p0 = scmp.ge.s32.totalorder %s666_s24, 1  ;;  %s666_s24 = sphi %s715_s24, %s17_s24  }
   0x2   : > { %p231_p1 = scmp.lt.s32.totalorder %s666_s24, 3 }
   0x4   : > { %p232_p2 = pnand %p572_p0, %p231_p1 }
   0x5   : > { %p257_p3 = scmp.lt.s32.totalorder (!%p232_p2), %s721_s25, 1  ;;  %p574_p4 = scmp.ne.s32.totalorder (!%p232_p2), %s721_s25, 0 }
   0x6   : > { %235 = sbr.rel (%p232_p2) target bundleno = 877 (0x36d), region = 48 }
   0xb   : > { %s258_s26 = scalar_select %p257_p3, %s721_s25, 1 }
   0xc   : > { %265 = sbr.rel (%p574_p4) target bundleno = 19 (0x13), region = 52 }
   0xd   : > { %s573_s27 = sshll.u32 %s258_s26, 1 }
   0xe   : > { %s730_s30 = scalar_lea.vmem %s804_s0, %s573_s27 }
  0x11   : > { %vm266_vm0 = vcmask 7168   ;;  %v668_v0 = vmov 0.0  }
  0x12   : > { %267 = vst.msk [vmem:[#allocation2] sm:$0xff] %vm266_vm0, %v668_v0  ;;  %268 = vst.msk [vmem:[#allocation3] sm:$0xff] %vm266_vm0, %v668_v0 }
  0x13 PF: > { %v647_v1 = vld [vmem:[%s805_s1 + $0x38] sm:$0xff]   ;;  %v669_v2 = vmov 0.0   ;;  %v648_v3 = vld [vmem:[%s805_s1 + $0x30] sm:$0xff]   ;;  %vm670_vm1 = vmmov 0   ;;  %v649_v4 = vld [vmem:[%s805_s1 + $0x28] sm:$0xff]   ;;  %vm404_vm2 = vcmask 31744   ;;  %v463_v31 = vlaneseq }
  0x14   : > { %603 = vmatprep.subr.bf16.mxu0 %v669_v2  ;;  %619 = vmatprep.mubr.msk.bf16.mxu0 %vm670_vm1, %v669_v2  ;;  %v650_v5 = vld [vmem:[%s805_s1 + $0x20] sm:$0xff]   ;;  %v651_v6 = vld [vmem:[%s805_s1 + $0x18] sm:$0xff]   ;;  %v652_v7 = vld [vmem:[%s805_s1 + $0x10] sm:$0xff]   ;;  %v671_v13 = vmov 0   ;;  %vm411_vm3 = vcmask 1041408   ;;  %s672_s15 = smov 8  }
  0x15   : > { %604 = vmatpush3.bf16.msra.mxu0 %v647_v1  ;;  %v653_v8 = vld [vmem:[%s805_s1 + $0x8] sm:$0xff]   ;;  %v654_v9 = vld [vmem:[%s805_s1] sm:$0xff]   ;;  %645 = vset.pattern.permute.xlu0 %v671_v13  ;;  %v380_v15 = vld [vmem:[%s807_s3 + $0x10] sm:$0xff]  ;;  %s673_s16 = smov 120   ;;  %v464_v32 = vand.u32 127, %v463_v31  ;;  %s587_s17 = sshll.u32 %s721_s25, 3 }
  0x16   : > { %605 = vmatprep.subr.bf16.mxu0 %v669_v2  ;;  %v269_v10 = vld [vmem:[%s730_s30] sm:$0x3]  ;;  %646 = vset.pattern.permute.xlu1 %v671_v13  ;;  %v379_v14 = vld [vmem:[%s807_s3 + $0x8] sm:$0xff]  ;;  %s500_s20 = scalar_lea.vmem %s811_s7, %s587_s17  ;;  %vm491_vm6 = vcmask 7168   ;;  %p588_p5 = scmp.ne.s32.totalorder %s721_s25, 1 }
  0x17   : > { %v655_v11 = vld [vmem:[%s806_s2] sm:$0xff]   ;;  %388 = vperm.xlu1 %646, %v379_v14   ;;  %v656_v21 = vld [vmem:[%s806_s2 + $0x8] ss:$0 sps:$4 sm:$0xff]   ;;  %vm467_vm4 = vcmp.ge.s32.totalorder %v464_v32, 8  ;;  %vm476_vm5 = vcmp.lt.s32.totalorder %v464_v32, 120 }
  0x18   : > { %625 = vmatprep.mubr.msk.bf16.mxu1 %vm404_vm2, %v655_v11  ;;  %v378_v12 = vld [vmem:[%s807_s3] sm:$0xff] }
  0x19   : > { %606 = vmatpush3.bf16.msra.mxu0 %v648_v3  ;;  %383 = vperm.xlu0 %645, %v378_v12   ;;  %v480_v16 = vld [vmem:[%s808_s4] sm:$0xff]  ;;  %v493_v47 = vld [vmem:[#allocation3] sm:$0xff] }
  0x1a   : > { %607 = vmatprep.subr.bf16.mxu0 %v669_v2  ;;  %v487_v45 = vld [vmem:[#allocation2] sm:$0xff] }
  0x1d   : > { %608 = vmatpush3.bf16.msra.mxu0 %v649_v4  ;;  %393 = vperm.xlu0 %645, %v380_v15  }
  0x1e   : > { %609 = vmatprep.subr.bf16.mxu0 %v669_v2 }
  0x21   : > { %610 = vmatpush3.bf16.msra.mxu0 %v650_v5  ;;  %483 = vperm.xlu0 %645, %v480_v16  }
  0x22   : > { %611 = vmatprep.subr.bf16.mxu0 %v669_v2 }
  0x25   : > { %612 = vmatpush3.bf16.msra.mxu0 %v651_v6 }
  0x26   : > { %613 = vmatprep.subr.bf16.mxu0 %v669_v2 }
  0x29   : > { %614 = vmatpush3.bf16.msra.mxu0 %v652_v7 }
  0x2a   : > { %615 = vmatprep.subr.bf16.mxu0 %v669_v2 }
  0x2d   : > { %616 = vmatpush3.bf16.msra.mxu0 %v653_v8 }
  0x2e   : > { %617 = vmatprep.subr.bf16.mxu0 %v669_v2 }
  0x31   : > { %618 = vmatpush3.bf16.msra.mxu0 %v654_v9 }
  0x34   : > { %620 = vmatmul.mubr.bf16.vlgmr.msra.gmra.mxu0 %v269_v10 }
  0x92   : > { %v389_v33 = vpop.permute.xlu1 %388 }
  0x94   : > { %v384_v24 = vpop.permute.xlu0 %383 }
  0x98   : > { %v394_v29 = vpop.permute.xlu0 %393 }
  0x9c   : > { %v484_v42 = vpop.permute.xlu0 %483 }
  0xf4   : > { %v368_v17 = vpop.f32.mrf.mxu0 }
  0xf5   : > { %v377_v18 = vpack.c.bf16 %v368_v17, %v368_v17 }
  0xf6   : > { %v621_v19 = vpop.f32.mrf.mxu0 }
  0xf7   : > { %629 = vmatprep.subr.msk.bf16.mxu1 %vm411_vm3, %v377_v18  ;;  %v413_v20 = vsel %vm411_vm3, %v377_v18, 0 }
  0xf8   : > { %v371_v22 = vpop.f32.mrf.mxu0  ;;  %624 = vmatpush3.bf16.msra.mxu1 %v413_v20 }
  0xfa   : > { %v622_v23 = vpop.f32.mrf.mxu0 }
  0xfb   : > { %626 = vmatmul.mubr.msk.bf16.vlgmr.msra.gmra.mxu1 %vm404_vm2, %v656_v21 }
 0x1bb   : > { %v627_v25 = vpop.f32.mrf.mxu1 }
 0x1bc   : > { %v458_v30 = vadd.f32 %v627_v25, %v394_v29 }
 0x1bd   : > { %v449_v26 = vpop.f32.mrf.mxu1 }
 0x1be   : > { %v450_v27 = vadd.f32 %v449_v26, %v384_v24 }
 0x1bf   : > { %v628_v28 = vpop.f32.mrf.mxu1 }
 0x1c0   : > { %465 = vrot.lane.b32.xlu1 %v450_v27, %s672_s15 }
 0x1c1   : > { %v452_v34 = vpop.f32.mrf.mxu1 }
 0x1c2   : > { %v453_v37 = vadd.f32 %v452_v34, %v389_v33 }
 0x1c4   : > { %473 = vrot.lane.b32.xlu1 %v458_v30, %s673_s16 }
 0x232   : > { %v466_v35 = vpop.permute.xlu1 %465 }
 0x233   : > { %v470_v36 = vsel %vm467_vm4, %v466_v35, 0.0 }
 0x234   : > { %v472_v38 = vadd.f32 %v470_v36, %v453_v37 }
 0x236   : > { %v474_v39 = vpop.permute.xlu1 %473 }
 0x237   : > { %v478_v40 = vsel %vm476_vm5, %v474_v39, 0.0 }
 0x238   : > { %v479_v41 = vadd.f32 %v478_v40, %v472_v38 }
 0x23a   : > { %v486_v43 = vadd.f32 %v484_v42, %v479_v41 }
 0x23c   : > { %501 = vst [vmem:[%s500_s20] sm:$0xff] %v486_v43  ;;  %488 = vadd.xlane.f32.xlu0 %v486_v43  ;;  %v494_v44 = vmul.f32 %v486_v43, %v486_v43 }
 0x23e   : > { %495 = vadd.xlane.f32.xlu1 %v494_v44 }
 0x2c5   : > { %v489_v46 = vpop.xlane.xlu0 %488 }
 0x2c6   : > { %v490_v48 = vadd.f32 %v489_v46, %v487_v45  ;;  %505 = sbr.rel (%p588_p5) target bundleno = 877 (0x36d), region = 56 }
 0x2c7   : > { %v496_v49 = vpop.xlane.xlu1 %495 }
 0x2c8   : > { %492 = vst.msk [vmem:[#allocation2] sm:$0xff] %vm491_vm6, %v490_v48  ;;  %v497_v50 = vadd.f32 %v496_v49, %v493_v47 }
 0x2ca   : > { %498 = vst.msk [vmem:[#allocation3] sm:$0xff] %vm491_vm6, %v497_v50 }
 0x2cb   : > { %v674_v53 = vmov 0   ;;  %v514_v59 = vld [vmem:[%s809_s5] sm:$0xff]  ;;  %v520_v2 = vld [vmem:[%s811_s7 + $0x8] sm:$0xff] }
 0x2cc   : > { %657 = vset.pattern.permute.xlu0 %v674_v53  ;;  %v516_v62 = vld [vmem:[%s810_s6] sm:$0xff] }
 0x2cd   : > { %v519_v1 = vld [vmem:[%s811_s7] sm:$0xff] }
 0x2cf   : > { %v506_v51 = vld [vmem:[#allocation2] sm:$0xff] }
 0x2d0   : > { %v507_v54 = vmul.f32 0.00390625, %v506_v51 }
 0x2d1   : > { %v508_v52 = vld [vmem:[#allocation3] sm:$0xff] }
 0x2d2   : > { %v509_v55 = vmul.f32 0.00390625, %v508_v52  ;;  %v510_v56 = vmul.f32 %v507_v54, %v507_v54 }
 0x2d4   : > { %v511_v57 = vsub.f32 %v509_v55, %v510_v56 }
 0x2d6   : > { %v512_v58 = vadd.f32 1e-05, %v511_v57 }
 0x2d8   : > { %658 = vrsqrt.f32 %v512_v58 }
 0x2e5   : > { %v659_v60 = vpop.eup %658 }
 0x2e6   : > { %v515_v61 = vmul.f32 %v659_v60, %v514_v59 }
 0x2e8   : > { %523 = vperm.xlu0 %657, %v515_v61   ;;  %v517_v63 = vmul.f32 %v515_v61, %v507_v54 }
 0x2ea   : > { %v518_v0 = vsub.f32 %v516_v62, %v517_v63 }
 0x2ec   : > { %530 = vperm.xlu0 %657, %v518_v0  }
 0x363   : > { %v524_v3 = vpop.permute.xlu0 %523 }
 0x364   : > { %v526_v4 = vmul.f32 %v524_v3, %v519_v1  ;;  %v527_v5 = vmul.f32 %v524_v3, %v520_v2 }
 0x367   : > { %v531_v6 = vpop.permute.xlu0 %530 }
 0x368   : > { %v533_v7 = vadd.f32 %v531_v6, %v526_v4  ;;  %v534_v8 = vadd.f32 %v531_v6, %v527_v5 }
 0x36a   : > { %v535_v9 = vmax.f32 %v533_v7, 0.0  ;;  %v536_v10 = vmax.f32 %v534_v8, 0.0 }
 0x36c   : > { %537 = vst [vmem:[%s811_s7] sm:$0xff] %v535_v9  ;;  %538 = vst [vmem:[%s811_s7 + $0x8] sm:$0xff] %v536_v10 }
 0x36d PF: > { %s17_s24 = sadd.s32 1, %s666_s24  }
 0x36e   : > { %p14_p6 = scmp.ge.s32.totalorder %s17_s24, 4  }
 0x370   :  { %16 = sbr.rel (!%p14_p6) target bundleno = 1 (0x1), region = 83 }

</bundles_post_ra>
